<compile_context>
chip_gen: v6e
topology: v6e:2x2x1
jax: 0.10.0
libtpu: 0.0.40
codegen_flags: <defaults>
</compile_context>

<pallas_src>
import functools

import jax
import jax.numpy as jnp
from jax import lax
from jax.experimental import pallas as pl
from jax.experimental.pallas import tpu as pltpu

MATMUL_DTYPE = jnp.bfloat16   # set to jnp.float32 for a bit-tighter numerics
HIDDEN_OUT_DTYPE = jnp.bfloat16

_MIB = 1 << 20


def _round_up(x, m):
    return (x + m - 1) // m * m


def _pick_tile(dim, candidates):
    for c in candidates:
        if dim % c == 0:
            return c
    return dim  # full dimension is always a legal block size


def _vmem_limit(nbytes):
    """Explicit scoped-VMEM request: >= common 32 MiB default, <= v7x 64 MiB."""
    need = int(nbytes * 1.5) + 2 * _MIB
    return int(min(max(need, 32 * _MIB), 64 * _MIB))


# ---------------------------------------------------------------------------
# Generic tiled matmul + bias kernel (input projection and vocab projection).
# Inputs arrive already in MATMUL_DTYPE (bf16); accumulation is f32.
# ---------------------------------------------------------------------------
def _matmul_bias_kernel(x_ref, w_ref, b_ref, o_ref):
    o_ref[...] = (jnp.dot(x_ref[...], w_ref[...],
                          preferred_element_type=jnp.float32)
                  + b_ref[...]).astype(o_ref.dtype)


def matmul_bias_pallas(x, w, b):
    """x: (M, K), w: (K, N), b: (1, N) -> (M, N) float32.  K kept whole.

    Grid order is (N-tiles, M-tiles): the weight block index depends only on
    the outer axis, so Pallas fetches each (K, tn) weight slab from HBM exactly
    once (w is the dominant HBM cost for the vocab projection)."""
    M, K = x.shape
    Kw, N = w.shape
    assert K == Kw and b.shape == (1, N)
    assert N % 128 == 0, "pad N to a multiple of 128 before calling"
    tm = _pick_tile(M, (256, 128, 64, 32, 16))   # bf16 sublane tile = 16
    tn = _pick_tile(N, (512, 256, 128))
    grid = (N // tn, M // tm)

    isz = x.dtype.itemsize
    footprint = (2 * (tm * K + K * tn) * isz   # double-buffered inputs
                 + 2 * tn * 4                  # bias
                 + 2 * tm * tn * 4)            # double-buffered f32 output
    return pl.pallas_call(
        _matmul_bias_kernel,
        out_shape=jax.ShapeDtypeStruct((M, N), jnp.float32),
        grid_spec=pltpu.PrefetchScalarGridSpec(
            num_scalar_prefetch=0,
            grid=grid,
            in_specs=[
                pl.BlockSpec((tm, K), lambda n, m: (m, 0)),
                pl.BlockSpec((K, tn), lambda n, m: (0, n)),   # fixed across inner axis
                pl.BlockSpec((1, tn), lambda n, m: (0, n)),
            ],
            out_specs=pl.BlockSpec((tm, tn), lambda n, m: (m, n)),
        ),
        compiler_params=pltpu.CompilerParams(
            dimension_semantics=("parallel", "parallel"),
            vmem_limit_bytes=_vmem_limit(footprint),
        ),
    )(x, w, b)


# ---------------------------------------------------------------------------
# LSTM recurrence.
#
# Fused path: one pallas_call, everything VMEM-resident, lax.fori_loop over T.
# Streaming path (large shapes): grid over T, xw streamed per step, W_hh^T
# copied from HBM into VMEM scratch exactly once at t == 0.
# ---------------------------------------------------------------------------
def _lstm_fused_kernel(xw_ref, whh_ref, hall_ref, h_sc, c_sc, *,
                       seq_len, hidden_pad):
    H = hidden_pad
    h_sc[...] = jnp.zeros_like(h_sc)
    c_sc[...] = jnp.zeros_like(c_sc)

    def step(t, carry):
        # gates = (x_t @ W_ih^T + b) [precomputed, VMEM-resident] + h @ W_hh^T
        gates = xw_ref[t] + jnp.dot(h_sc[...].astype(whh_ref.dtype),
                                    whh_ref[...],
                                    preferred_element_type=jnp.float32)
        # H is a multiple of 128 -> lane-aligned gate slices.
        i_g = jax.nn.sigmoid(gates[:, 0 * H:1 * H])
        f_g = jax.nn.sigmoid(gates[:, 1 * H:2 * H])
        g_g = jnp.tanh(gates[:, 2 * H:3 * H])
        o_g = jax.nn.sigmoid(gates[:, 3 * H:4 * H])
        c_new = f_g * c_sc[...] + i_g * g_g
        h_new = o_g * jnp.tanh(c_new)
        c_sc[...] = c_new
        h_sc[...] = h_new
        hall_ref[t] = h_new.astype(hall_ref.dtype)
        return carry

    lax.fori_loop(0, seq_len, step, 0)


def _lstm_streaming_kernel(xw_ref, whh_hbm, hall_ref,
                           h_sc, c_sc, whh_vmem, dma_sem, *, hidden_pad):
    t = pl.program_id(0)

    @pl.when(t == 0)
    def _():
        cp = pltpu.make_async_copy(whh_hbm, whh_vmem, dma_sem)
        cp.start()
        cp.wait()
        h_sc[...] = jnp.zeros_like(h_sc)
        c_sc[...] = jnp.zeros_like(c_sc)

    H = hidden_pad
    gates = xw_ref[...] + jnp.dot(h_sc[...].astype(whh_vmem.dtype),
                                  whh_vmem[...],
                                  preferred_element_type=jnp.float32)
    i_g = jax.nn.sigmoid(gates[:, 0 * H:1 * H])
    f_g = jax.nn.sigmoid(gates[:, 1 * H:2 * H])
    g_g = jnp.tanh(gates[:, 2 * H:3 * H])
    o_g = jax.nn.sigmoid(gates[:, 3 * H:4 * H])
    c_new = f_g * c_sc[...] + i_g * g_g
    h_new = o_g * jnp.tanh(c_new)
    c_sc[...] = c_new
    h_sc[...] = h_new
    hall_ref[...] = h_new.astype(hall_ref.dtype)


def lstm_recurrence_pallas(xw_tbg, w_hh_t, out_dtype=HIDDEN_OUT_DTYPE):
    """xw_tbg: (T, B_pad, 4*H_pad) f32 precomputed x-projection (+bias);
    w_hh_t: (H_pad, 4*H_pad) MATMUL_DTYPE.  Returns (T, B_pad, H_pad) out_dtype."""
    T, B_pad, G = xw_tbg.shape
    H_pad = G // 4
    out_isz = jnp.dtype(out_dtype).itemsize
    w_bytes = H_pad * G * w_hh_t.dtype.itemsize
    state_bytes = 2 * B_pad * H_pad * 4

    fused_bytes = (T * B_pad * G * 4 + w_bytes
                   + T * B_pad * H_pad * out_isz + state_bytes)
    if fused_bytes <= 48 * _MIB:
        kernel = functools.partial(_lstm_fused_kernel,
                                   seq_len=T, hidden_pad=H_pad)
        return pl.pallas_call(
            kernel,
            out_shape=jax.ShapeDtypeStruct((T, B_pad, H_pad), out_dtype),
            scratch_shapes=[
                pltpu.VMEM((B_pad, H_pad), jnp.float32),   # h state
                pltpu.VMEM((B_pad, H_pad), jnp.float32),   # c state
            ],
            compiler_params=pltpu.CompilerParams(
                vmem_limit_bytes=_vmem_limit(fused_bytes)),
        )(xw_tbg, w_hh_t)

    # Streaming fallback for shapes that do not fit in VMEM.
    kernel = functools.partial(_lstm_streaming_kernel, hidden_pad=H_pad)
    stream_bytes = (2 * B_pad * G * 4 + w_bytes
                    + 2 * B_pad * H_pad * out_isz + state_bytes)
    return pl.pallas_call(
        kernel,
        out_shape=jax.ShapeDtypeStruct((T, B_pad, H_pad), out_dtype),
        grid_spec=pltpu.PrefetchScalarGridSpec(
            num_scalar_prefetch=0,
            grid=(T,),
            in_specs=[
                pl.BlockSpec((None, B_pad, G), lambda t: (t, 0, 0)),   # xw_t
                pl.BlockSpec(memory_space=pl.ANY),                     # W_hh^T (HBM)
            ],
            out_specs=pl.BlockSpec((None, B_pad, H_pad), lambda t: (t, 0, 0)),
            scratch_shapes=[
                pltpu.VMEM((B_pad, H_pad), jnp.float32),       # h state
                pltpu.VMEM((B_pad, H_pad), jnp.float32),       # c state
                pltpu.VMEM((H_pad, G), w_hh_t.dtype),          # resident W_hh^T
                pltpu.SemaphoreType.DMA,                       # one-time weight DMA
            ],
        ),
        compiler_params=pltpu.CompilerParams(
            dimension_semantics=("arbitrary",),                # true recurrence
            vmem_limit_bytes=_vmem_limit(stream_bytes),
        ),
    )(xw_tbg, w_hh_t)


# ---------------------------------------------------------------------------
# Parameter preparation: PyTorch-layout params -> padded, transposed, bf16
# kernel layout.  Padding is zero so padded h/c stay exactly zero and padded
# W_fc rows / vocab columns contribute nothing (sliced off at the end).
# ---------------------------------------------------------------------------
def prepare_kernel_params(params):
    w_ih = params["w_ih"]                 # (4H, E)
    w_hh = params["w_hh"]                 # (4H, H)
    b = params["b_ih"] + params["b_hh"]   # (4H,)
    w_fc = params["w_fc"]                 # (V, H)
    b_fc = params["b_fc"]                 # (V,)

    H = w_hh.shape[1]
    E = w_ih.shape[1]
    V = w_fc.shape[0]
    H_pad = _round_up(H, 128)
    E_pad = _round_up(E, 128)
    V_pad = _round_up(V, 256)
    pad_h = H_pad - H

    def pad_gate_rows(w):                 # (4H, X) -> (4H_pad, X), per-gate pad
        parts = jnp.split(w, 4, axis=0)
        parts = [jnp.pad(p, ((0, pad_h), (0, 0))) for p in parts]
        return jnp.concatenate(parts, axis=0)

    w_ih_p = pad_gate_rows(jnp.pad(w_ih, ((0, 0), (0, E_pad - E))))  # (4H_pad, E_pad)
    w_hh_p = pad_gate_rows(jnp.pad(w_hh, ((0, 0), (0, pad_h))))      # (4H_pad, H_pad)
    b_parts = jnp.split(b, 4)
    b_p = jnp.concatenate([jnp.pad(p, (0, pad_h)) for p in b_parts])

    w_fc_t = jnp.pad(jnp.transpose(w_fc), ((0, pad_h), (0, V_pad - V)))  # (H_pad, V_pad)
    b_fc_p = jnp.pad(b_fc, (0, V_pad - V))

    return {
        "w_ih_t": jnp.transpose(w_ih_p).astype(MATMUL_DTYPE),   # (E_pad, 4H_pad)
        "w_hh_t": jnp.transpose(w_hh_p).astype(MATMUL_DTYPE),   # (H_pad, 4H_pad)
        "b_gates": b_p[None, :].astype(jnp.float32),            # (1, 4H_pad)
        "w_fc_t": w_fc_t.astype(MATMUL_DTYPE),                  # (H_pad, V_pad)
        "b_fc": b_fc_p[None, :].astype(jnp.float32),            # (1, V_pad)
    }


# ---------------------------------------------------------------------------
# Full forward pass (matches PyTorch rnn_decoder.forward semantics).
# ---------------------------------------------------------------------------
@jax.jit
def rnn_decoder_forward(params, features, captions):
    """features: (B, E) f32; captions: (B, T) int32 -> logits (B, T, V) f32."""
    kp = prepare_kernel_params(params)

    B, E = features.shape
    V = params["w_fc"].shape[0]
    E_pad = kp["w_ih_t"].shape[0]
    H_pad = kp["w_hh_t"].shape[0]
    V_pad = kp["w_fc_t"].shape[1]

    # Embedding gather + feature prepend (plain-JAX glue).
    tokens = captions[:, :-1]                                      # (B, T-1)
    emb = jnp.take(params["embedding"], tokens, axis=0)            # (B, T-1, E)
    seq = jnp.concatenate([features[:, None, :], emb], axis=1)     # (B, T, E)
    T = seq.shape[1]

    # Pad batch to 16 (bf16 sublane tile) and E to 128 (lane tile).
    B_pad = max(_round_up(B, 16), 16)
    seq = jnp.pad(seq, ((0, B_pad - B), (0, 0), (0, E_pad - E)))
    # Time-major for the recurrence; cast activations at the source (bf16).
    seq_tbe = jnp.transpose(seq, (1, 0, 2)).astype(MATMUL_DTYPE)   # (T, B_pad, E_pad)

    # 1) Hoisted input projection over ALL timesteps at once.
    xw_flat = matmul_bias_pallas(seq_tbe.reshape(T * B_pad, E_pad),
                                 kp["w_ih_t"], kp["b_gates"])      # f32
    xw = xw_flat.reshape(T, B_pad, 4 * H_pad)

    # 2) Sequential LSTM recurrence (single fused kernel, fori_loop over T).
    h_all = lstm_recurrence_pallas(xw, kp["w_hh_t"])               # (T,B_pad,H_pad) bf16

    # 3) Vocab projection batched over all (b, t).  Only the NARROW bf16 hidden
    #    states are transposed to batch-major; the wide logits come out
    #    directly in (B, T, V_pad) layout.
    h_bt = jnp.transpose(h_all, (1, 0, 2)).reshape(B_pad * T, H_pad)
    logits_flat = matmul_bias_pallas(h_bt, kp["w_fc_t"], kp["b_fc"])
    logits = logits_flat.reshape(B_pad, T, V_pad)
    return logits[:B, :, :V]


# ---------------------------------------------------------------------------
# Pure-JAX f32 reference (lax.scan LSTM) for correctness checking.
# ---------------------------------------------------------------------------
def _reference_forward(params, features, captions):
    tokens = captions[:, :-1]
    emb = jnp.take(params["embedding"], tokens, axis=0)
    seq = jnp.concatenate([features[:, None, :], emb], axis=1)     # (B, T, E)
    seq_tbe = jnp.transpose(seq, (1, 0, 2))

    H = params["w_hh"].shape[1]
    B = features.shape[0]
    w_ih_t = params["w_ih"].T
    w_hh_t = params["w_hh"].T
    b = params["b_ih"] + params["b_hh"]
    w_fc_t = params["w_fc"].T

    def step(carry, x_t):
        h, c = carry
        g = x_t @ w_ih_t + h @ w_hh_t + b
        i = jax.nn.sigmoid(g[:, 0 * H:1 * H])
        f = jax.nn.sigmoid(g[:, 1 * H:2 * H])
        gg = jnp.tanh(g[:, 2 * H:3 * H])
        o = jax.nn.sigmoid(g[:, 3 * H:4 * H])
        c = f * c + i * gg
        h = o * jnp.tanh(c)
        return (h, c), h @ w_fc_t + params["b_fc"]

    init = (jnp.zeros((B, H), jnp.float32), jnp.zeros((B, H), jnp.float32))
    _, out = lax.scan(step, init, seq_tbe)
    return jnp.transpose(out, (1, 0, 2))


def init_params(key, embed_size, hidden_size, vocab_size):
    """PyTorch-layout parameters (gate order [i, f, g, o])."""
    ks = jax.random.split(key, 7)
    scale = 0.1
    return {
        "embedding": scale * jax.random.normal(ks[0], (vocab_size, embed_size), jnp.float32),
        "w_ih": scale * jax.random.normal(ks[1], (4 * hidden_size, embed_size), jnp.float32),
        "w_hh": scale * jax.random.normal(ks[2], (4 * hidden_size, hidden_size), jnp.float32),
        "b_ih": scale * jax.random.normal(ks[3], (4 * hidden_size,), jnp.float32),
        "b_hh": scale * jax.random.normal(ks[4], (4 * hidden_size,), jnp.float32),
        "w_fc": scale * jax.random.normal(ks[5], (vocab_size, hidden_size), jnp.float32),
        "b_fc": scale * jax.random.normal(ks[6], (vocab_size,), jnp.float32),
    }


if __name__ == "__main__":
    embed_size = 16
    hidden_size = 32
    vocab_size = 128
    batch = 2
    cap_len = 8          # LSTM sequence length is also 8

    key = jax.random.PRNGKey(0)
    k_param, k_feat, k_cap = jax.random.split(key, 3)

    params = init_params(k_param, embed_size, hidden_size, vocab_size)
    features = jax.random.normal(k_feat, (batch, embed_size), jnp.float32)
    captions = jax.random.randint(k_cap, (batch, cap_len), 0, vocab_size, jnp.int32)

    out = jax.block_until_ready(rnn_decoder_forward(params, features, captions))
    ref = jax.block_until_ready(_reference_forward(params, features, captions))

    assert out.shape == (batch, cap_len, vocab_size)
    # bf16 matmul path vs f32 reference: tolerance loosened accordingly.
    assert jnp.allclose(out, ref, atol=2e-2, rtol=2e-2), \
        f"max abs diff {jnp.max(jnp.abs(out - ref))}"

    print("KERNEL_OK")
</pallas_src>

<mosaic_0001>
module attributes {stable_mosaic.version = 11 : i64} {
  func.func @_matmul_bias_kernel(%arg0: i32, %arg1: i32, %arg2: memref<128x128xbf16, #tpu.memory_space<vmem>>, %arg3: memref<128x512xbf16, #tpu.memory_space<vmem>>, %arg4: memref<1x512xf32, #tpu.memory_space<vmem>>, %arg5: memref<128x512xf32, #tpu.memory_space<vmem>>) attributes {dimension_semantics = [#tpu.dimension_semantics<parallel>, #tpu.dimension_semantics<parallel>], iteration_bounds = array<i64: 1, 1>, scalar_prefetch = 0 : i64, scratch_operands = 0 : i64, tpu.core_type = #tpu.core_type<tc>, window_params = [{transform_indices = @transform_0, window_bounds = array<i64: 128, 128>}, {transform_indices = @transform_1, window_bounds = array<i64: 128, 512>}, {transform_indices = @transform_2, window_bounds = array<i64: 1, 512>}, {transform_indices = @transform_3, window_bounds = array<i64: 128, 512>}]} {
    %c0 = arith.constant 0 : index
    %c0_0 = arith.constant 0 : index
    %0 = vector.load %arg2[%c0, %c0_0] : memref<128x128xbf16, #tpu.memory_space<vmem>>, vector<128x128xbf16>
    %c0_1 = arith.constant 0 : index
    %c0_2 = arith.constant 0 : index
    %1 = vector.load %arg3[%c0_1, %c0_2] : memref<128x512xbf16, #tpu.memory_space<vmem>>, vector<128x512xbf16>
    %cst = arith.constant dense<0.000000e+00> : vector<128x512xf32>
    %2 = tpu.matmul %0, %1, %cst {dimension_numbers = #tpu.dot_dimension_numbers<[1], [0], [0], [1], [0, 0, 1, 1], [], []>} : vector<128x128xbf16>, vector<128x512xbf16>, vector<128x512xf32> -> vector<128x512xf32>
    %c0_3 = arith.constant 0 : index
    %c0_4 = arith.constant 0 : index
    %3 = vector.load %arg4[%c0_3, %c0_4] : memref<1x512xf32, #tpu.memory_space<vmem>>, vector<1x512xf32>
    %4 = vector.broadcast %3 : vector<1x512xf32> to vector<128x512xf32>
    %5 = arith.addf %2, %4 : vector<128x512xf32>
    %c0_5 = arith.constant 0 : index
    %c0_6 = arith.constant 0 : index
    %6 = vector.load %arg5[%c0_5, %c0_6] : memref<128x512xf32, #tpu.memory_space<vmem>>, vector<128x512xf32>
    tpu.vector_store %arg5[%c0_5, %c0_6], %5 {strides = array<i32>} : memref<128x512xf32, #tpu.memory_space<vmem>>, vector<128x512xf32>,
    return
  }
  func.func @transform_0(%arg0: i32, %arg1: i32) -> (i32, i32) {
    %c0_i32 = arith.constant 0 : i32
    %c0_i32_0 = arith.constant 0 : i32
    return %arg1, %c0_i32 : i32, i32
  }
  func.func @transform_1(%arg0: i32, %arg1: i32) -> (i32, i32) {
    %c0_i32 = arith.constant 0 : i32
    %c0_i32_0 = arith.constant 0 : i32
    return %c0_i32, %arg0 : i32, i32
  }
  func.func @transform_2(%arg0: i32, %arg1: i32) -> (i32, i32) {
    %c0_i32 = arith.constant 0 : i32
    %c0_i32_0 = arith.constant 0 : i32
    return %c0_i32, %arg0 : i32, i32
  }
  func.func @transform_3(%arg0: i32, %arg1: i32) -> (i32, i32) {
    %c0_i32 = arith.constant 0 : i32
    return %arg1, %arg0 : i32, i32
  }
}

module attributes {stable_mosaic.version = 11 : i64} {
  func.func @_lstm_fused_kernel(%arg0: memref<8x16x512xf32, #tpu.memory_space<vmem>>, %arg1: memref<128x512xbf16, #tpu.memory_space<vmem>>, %arg2: memref<8x16x128xbf16, #tpu.memory_space<vmem>>, %arg3: memref<16x128xf32, #tpu.memory_space<vmem>>, %arg4: memref<16x128xf32, #tpu.memory_space<vmem>>) attributes {dimension_semantics = [], scalar_prefetch = 0 : i64, scratch_operands = 2 : i64, tpu.core_type = #tpu.core_type<tc>} {
    %cst = arith.constant 0.000000e+00 : f32
    %0 = vector.broadcast %cst : f32 to vector<16x128xf32>
    %c0 = arith.constant 0 : index
    %c0_0 = arith.constant 0 : index
    %1 = vector.load %arg3[%c0, %c0_0] : memref<16x128xf32, #tpu.memory_space<vmem>>, vector<16x128xf32>
    tpu.vector_store %arg3[%c0, %c0_0], %0 {strides = array<i32>} : memref<16x128xf32, #tpu.memory_space<vmem>>, vector<16x128xf32>,
    %cst_1 = arith.constant 0.000000e+00 : f32
    %2 = vector.broadcast %cst_1 : f32 to vector<16x128xf32>
    %c0_2 = arith.constant 0 : index
    %c0_3 = arith.constant 0 : index
    %3 = vector.load %arg4[%c0_2, %c0_3] : memref<16x128xf32, #tpu.memory_space<vmem>>, vector<16x128xf32>
    tpu.vector_store %arg4[%c0_2, %c0_3], %2 {strides = array<i32>} : memref<16x128xf32, #tpu.memory_space<vmem>>, vector<16x128xf32>,
    %c0_i32 = arith.constant 0 : i32
    %c8_i32 = arith.constant 8 : i32
    %4 = arith.addi %c0_i32, %c8_i32 : i32
    %c1_i32 = arith.constant 1 : i32
    scf.for %arg5 = %c0_i32 to %4 step %c1_i32  : i32 {
      %5 = arith.index_cast %arg5 : i32 to index
      %c0_5 = arith.constant 0 : index
      %c0_6 = arith.constant 0 : index
      %6 = vector.load %arg0[%5, %c0_5, %c0_6] : memref<8x16x512xf32, #tpu.memory_space<vmem>>, vector<1x16x512xf32>
      %7 = vector.shape_cast %6 : vector<1x16x512xf32> to vector<16x512xf32>
      %c0_7 = arith.constant 0 : index
      %c0_8 = arith.constant 0 : index
      %8 = vector.load %arg3[%c0_7, %c0_8] : memref<16x128xf32, #tpu.memory_space<vmem>>, vector<16x128xf32>
      %9 = arith.truncf %8 : vector<16x128xf32> to vector<16x128xbf16>
      %c0_9 = arith.constant 0 : index
      %c0_10 = arith.constant 0 : index
      %10 = vector.load %arg1[%c0_9, %c0_10] : memref<128x512xbf16, #tpu.memory_space<vmem>>, vector<128x512xbf16>
      %cst_11 = arith.constant dense<0.000000e+00> : vector<16x512xf32>
      %11 = tpu.matmul %9, %10, %cst_11 {dimension_numbers = #tpu.dot_dimension_numbers<[1], [0], [0], [1], [0, 0, 1, 1], [], []>} : vector<16x128xbf16>, vector<128x512xbf16>, vector<16x512xf32> -> vector<16x512xf32>
      %12 = arith.addf %7, %11 : vector<16x512xf32>
      %13 = vector.extract_strided_slice %12 {offsets = [0, 0], sizes = [16, 128], strides = [1, 1]} : vector<16x512xf32> to vector<16x128xf32>
      %14 = arith.negf %13 : vector<16x128xf32>
      %15 = math.exp %14 : vector<16x128xf32>
      %cst_12 = arith.constant 1.000000e+00 : f32
      %16 = vector.broadcast %cst_12 : f32 to vector<16x128xf32>
      %17 = arith.addf %16, %15 : vector<16x128xf32>
      %18 = arith.divf %16, %17 : vector<16x128xf32>
      %19 = vector.extract_strided_slice %12 {offsets = [0, 128], sizes = [16, 128], strides = [1, 1]} : vector<16x512xf32> to vector<16x128xf32>
      %20 = arith.negf %19 : vector<16x128xf32>
      %21 = math.exp %20 : vector<16x128xf32>
      %cst_13 = arith.constant 1.000000e+00 : f32
      %22 = vector.broadcast %cst_13 : f32 to vector<16x128xf32>
      %23 = arith.addf %22, %21 : vector<16x128xf32>
      %24 = arith.divf %22, %23 : vector<16x128xf32>
      %25 = vector.extract_strided_slice %12 {offsets = [0, 256], sizes = [16, 128], strides = [1, 1]} : vector<16x512xf32> to vector<16x128xf32>
      %26 = math.tanh %25 : vector<16x128xf32>
      %27 = vector.extract_strided_slice %12 {offsets = [0, 384], sizes = [16, 128], strides = [1, 1]} : vector<16x512xf32> to vector<16x128xf32>
      %28 = arith.negf %27 : vector<16x128xf32>
      %29 = math.exp %28 : vector<16x128xf32>
      %cst_14 = arith.constant 1.000000e+00 : f32
      %30 = vector.broadcast %cst_14 : f32 to vector<16x128xf32>
      %31 = arith.addf %30, %29 : vector<16x128xf32>
      %32 = arith.divf %30, %31 : vector<16x128xf32>
      %c0_15 = arith.constant 0 : index
      %c0_16 = arith.constant 0 : index
      %33 = vector.load %arg4[%c0_15, %c0_16] : memref<16x128xf32, #tpu.memory_space<vmem>>, vector<16x128xf32>
      %34 = arith.mulf %24, %33 : vector<16x128xf32>
      %35 = arith.mulf %18, %26 : vector<16x128xf32>
      %36 = arith.addf %34, %35 : vector<16x128xf32>
      %37 = math.tanh %36 : vector<16x128xf32>
      %38 = arith.mulf %32, %37 : vector<16x128xf32>
      %c0_17 = arith.constant 0 : index
      %c0_18 = arith.constant 0 : index
      %39 = vector.load %arg4[%c0_17, %c0_18] : memref<16x128xf32, #tpu.memory_space<vmem>>, vector<16x128xf32>
      tpu.vector_store %arg4[%c0_17, %c0_18], %36 {strides = array<i32>} : memref<16x128xf32, #tpu.memory_space<vmem>>, vector<16x128xf32>,
      %c0_19 = arith.constant 0 : index
      %c0_20 = arith.constant 0 : index
      %40 = vector.load %arg3[%c0_19, %c0_20] : memref<16x128xf32, #tpu.memory_space<vmem>>, vector<16x128xf32>
      tpu.vector_store %arg3[%c0_19, %c0_20], %38 {strides = array<i32>} : memref<16x128xf32, #tpu.memory_space<vmem>>, vector<16x128xf32>,
      %41 = arith.truncf %38 : vector<16x128xf32> to vector<16x128xbf16>
      %42 = arith.index_cast %arg5 : i32 to index
      %c0_21 = arith.constant 0 : index
      %c0_22 = arith.constant 0 : index
      %43 = vector.load %arg2[%42, %c0_21, %c0_22] : memref<8x16x128xbf16, #tpu.memory_space<vmem>>, vector<1x16x128xbf16>
      %44 = vector.shape_cast %43 : vector<1x16x128xbf16> to vector<16x128xbf16>
      %45 = vector.shape_cast %41 : vector<16x128xbf16> to vector<1x16x128xbf16>
      tpu.vector_store %arg2[%42, %c0_21, %c0_22], %45 {strides = array<i32>} : memref<8x16x128xbf16, #tpu.memory_space<vmem>>, vector<1x16x128xbf16>,
    }
    %c8_i32_4 = arith.constant 8 : i32
    return
  }
}

module attributes {stable_mosaic.version = 11 : i64} {
  func.func @_matmul_bias_kernel(%arg0: i32, %arg1: i32, %arg2: memref<128x128xbf16, #tpu.memory_space<vmem>>, %arg3: memref<128x256xbf16, #tpu.memory_space<vmem>>, %arg4: memref<1x256xf32, #tpu.memory_space<vmem>>, %arg5: memref<128x256xf32, #tpu.memory_space<vmem>>) attributes {dimension_semantics = [#tpu.dimension_semantics<parallel>, #tpu.dimension_semantics<parallel>], iteration_bounds = array<i64: 1, 1>, scalar_prefetch = 0 : i64, scratch_operands = 0 : i64, tpu.core_type = #tpu.core_type<tc>, window_params = [{transform_indices = @transform_0, window_bounds = array<i64: 128, 128>}, {transform_indices = @transform_1, window_bounds = array<i64: 128, 256>}, {transform_indices = @transform_2, window_bounds = array<i64: 1, 256>}, {transform_indices = @transform_3, window_bounds = array<i64: 128, 256>}]} {
    %c0 = arith.constant 0 : index
    %c0_0 = arith.constant 0 : index
    %0 = vector.load %arg2[%c0, %c0_0] : memref<128x128xbf16, #tpu.memory_space<vmem>>, vector<128x128xbf16>
    %c0_1 = arith.constant 0 : index
    %c0_2 = arith.constant 0 : index
    %1 = vector.load %arg3[%c0_1, %c0_2] : memref<128x256xbf16, #tpu.memory_space<vmem>>, vector<128x256xbf16>
    %cst = arith.constant dense<0.000000e+00> : vector<128x256xf32>
    %2 = tpu.matmul %0, %1, %cst {dimension_numbers = #tpu.dot_dimension_numbers<[1], [0], [0], [1], [0, 0, 1, 1], [], []>} : vector<128x128xbf16>, vector<128x256xbf16>, vector<128x256xf32> -> vector<128x256xf32>
    %c0_3 = arith.constant 0 : index
    %c0_4 = arith.constant 0 : index
    %3 = vector.load %arg4[%c0_3, %c0_4] : memref<1x256xf32, #tpu.memory_space<vmem>>, vector<1x256xf32>
    %4 = vector.broadcast %3 : vector<1x256xf32> to vector<128x256xf32>
    %5 = arith.addf %2, %4 : vector<128x256xf32>
    %c0_5 = arith.constant 0 : index
    %c0_6 = arith.constant 0 : index
    %6 = vector.load %arg5[%c0_5, %c0_6] : memref<128x256xf32, #tpu.memory_space<vmem>>, vector<128x256xf32>
    tpu.vector_store %arg5[%c0_5, %c0_6], %5 {strides = array<i32>} : memref<128x256xf32, #tpu.memory_space<vmem>>, vector<128x256xf32>,
    return
  }
  func.func @transform_0(%arg0: i32, %arg1: i32) -> (i32, i32) {
    %c0_i32 = arith.constant 0 : i32
    %c0_i32_0 = arith.constant 0 : i32
    return %arg1, %c0_i32 : i32, i32
  }
  func.func @transform_1(%arg0: i32, %arg1: i32) -> (i32, i32) {
    %c0_i32 = arith.constant 0 : i32
    %c0_i32_0 = arith.constant 0 : i32
    return %c0_i32, %arg0 : i32, i32
  }
  func.func @transform_2(%arg0: i32, %arg1: i32) -> (i32, i32) {
    %c0_i32 = arith.constant 0 : i32
    %c0_i32_0 = arith.constant 0 : i32
    return %c0_i32, %arg0 : i32, i32
  }
  func.func @transform_3(%arg0: i32, %arg1: i32) -> (i32, i32) {
    %c0_i32 = arith.constant 0 : i32
    return %arg1, %arg0 : i32, i32
  }
}

</mosaic_0001>

<bundles_post_ra>
// kernel: rnn_decoder_forward.4
= control target key start
LH: loop header
LB: loop body
LE: loop exit
PB: predicated region body
PF: predicated region fallthrough
CT: control target
= control target key end

     0   :  { %v553_v0 = vmov 0.0   ;;  %s570_s9 = smov 0   ;;  %s692_s0 = inlined_call_operand.vmem [shape: f32[8,16,512], index: 0, kind: input, shape index: {}]   ;;  %s693_s1 = inlined_call_operand.vmem [shape: bf16[128,512], index: 1, kind: input, shape index: {}]   ;;  %s694_s2 = inlined_call_operand.vmem [shape: bf16[8,16,128], index: 2, kind: output, shape index: {}]  }
   0x1   :  { %12 = vst [vmem:[#allocation2] sm:$0xff] %v553_v0  ;;  %13 = vst [vmem:[#allocation2 + $0x8] sm:$0xff] %v553_v0 }
   0x2   :  { %14 = vst [vmem:[#allocation3 + $0x8] sm:$0xff] %v553_v0  ;;  %15 = vst [vmem:[#allocation3] sm:$0xff] %v553_v0 }
   0x3 LB: > { %v465_v1 = vld [vmem:[%s693_s1 + $0xe4] ss:$16 sps:$4 sm:$0xff]   ;;  %v467_v2 = vld [vmem:[%s693_s1 + $0xe0] ss:$16 sps:$4 sm:$0xff]   ;;  %v554_v3 = vmov 0   ;;  %s446_s20 = sshll.u32 %s551_s9, 6  ;;  %s551_s9 = sphi %s570_s9, %s21_s9  }
   0x4   : > { %260 = vmatprep.mubr.bf16.mxu0 %v554_v3  ;;  %303 = vmatprep.mubr.bf16.mxu1 %v554_v3  ;;  %v468_v4 = vld [vmem:[%s693_s1 + $0xc4] ss:$16 sps:$4 sm:$0xff]   ;;  %v470_v5 = vld [vmem:[%s693_s1 + $0xc0] ss:$16 sps:$4 sm:$0xff]   ;;  %v476_v7 = vld [vmem:[%s693_s1 + $0xec] ss:$16 sps:$4 sm:$0xff]   ;;  %s675_s23 = scalar_lea.vmem %s692_s0, %s446_s20 }
   0x5   : > { %228 = vmatprep.subr.bf16.mxu0 %v465_v1  ;;  %v471_v6 = vld [vmem:[%s693_s1 + $0xa4] ss:$16 sps:$4 sm:$0xff]   ;;  %v479_v8 = vld [vmem:[%s693_s1 + $0xe8] ss:$16 sps:$4 sm:$0xff]   ;;  %v473_v9 = vld [vmem:[%s693_s1 + $0xa0] ss:$16 sps:$4 sm:$0xff]   ;;  %271 = vmatprep.subr.bf16.mxu1 %v476_v7 }
   0x6   : > { %229 = vmatpush1.bf16.msra.mxu0 %v467_v2  ;;  %v474_v10 = vld [vmem:[%s693_s1 + $0x84] ss:$16 sps:$4 sm:$0xff]   ;;  %272 = vmatpush1.bf16.msra.mxu1 %v479_v8  ;;  %v482_v11 = vld [vmem:[%s693_s1 + $0xcc] ss:$16 sps:$4 sm:$0xff]   ;;  %v485_v12 = vld [vmem:[%s693_s1 + $0xc8] ss:$16 sps:$4 sm:$0xff]  }
   0x7   : > { %230 = vmatprep.subr.bf16.mxu0 %v468_v4  ;;  %273 = vmatprep.subr.bf16.mxu1 %v482_v11  ;;  %v478_v13 = vld [vmem:[%s693_s1 + $0x80] ss:$16 sps:$4 sm:$0xff]   ;;  %v480_v14 = vld [vmem:[%s693_s1 + $0x64] ss:$16 sps:$4 sm:$0xff]   ;;  %v488_v15 = vld [vmem:[%s693_s1 + $0xac] ss:$16 sps:$4 sm:$0xff]  }
   0x8   : > { %v491_v16 = vld [vmem:[%s693_s1 + $0xa8] ss:$16 sps:$4 sm:$0xff]   ;;  %v494_v17 = vld [vmem:[%s693_s1 + $0x8c] ss:$16 sps:$4 sm:$0xff]   ;;  %v484_v18 = vld [vmem:[%s693_s1 + $0x60] ss:$16 sps:$4 sm:$0xff]  }
   0x9   : > { %v486_v19 = vld [vmem:[%s693_s1 + $0x44] ss:$16 sps:$4 sm:$0xff]   ;;  %v497_v20 = vld [vmem:[%s693_s1 + $0x88] ss:$16 sps:$4 sm:$0xff]   ;;  %v500_v21 = vld [vmem:[%s693_s1 + $0x6c] ss:$16 sps:$4 sm:$0xff]  }
   0xa   : > { %231 = vmatpush1.bf16.msra.mxu0 %v470_v5  ;;  %274 = vmatpush1.bf16.msra.mxu1 %v485_v12  ;;  %v490_v22 = vld [vmem:[%s693_s1 + $0x40] ss:$16 sps:$4 sm:$0xff]   ;;  %v492_v23 = vld [vmem:[%s693_s1 + $0x24] ss:$16 sps:$4 sm:$0xff]   ;;  %v503_v24 = vld [vmem:[%s693_s1 + $0x68] ss:$16 sps:$4 sm:$0xff]  }
   0xb   : > { %232 = vmatprep.subr.bf16.mxu0 %v471_v6  ;;  %275 = vmatprep.subr.bf16.mxu1 %v488_v15  ;;  %v504_v25 = vld [vmem:[%s693_s1 + $0x4c] ss:$16 sps:$4 sm:$0xff]   ;;  %v496_v26 = vld [vmem:[%s693_s1 + $0x20] ss:$16 sps:$4 sm:$0xff]   ;;  %v498_v27 = vld [vmem:[%s693_s1 + $0x4] ss:$16 sps:$4 sm:$0xff]  }
   0xc   : > { %v506_v28 = vld [vmem:[%s693_s1 + $0x48] ss:$16 sps:$4 sm:$0xff]   ;;  %v507_v29 = vld [vmem:[%s693_s1 + $0x2c] ss:$16 sps:$4 sm:$0xff]   ;;  %v502_v30 = vld [vmem:[%s693_s1] ss:$16 sps:$4 sm:$0xff]  }
   0xd   : > { %v33_v31 = vld [vmem:[#allocation2] sm:$0xff]  ;;  %v34_v32 = vld [vmem:[#allocation2 + $0x8] sm:$0xff]  ;;  %v28_v55 = vld [vmem:[%s675_s23 + $0x18] sm:$0xff]  ;;  %s449_s24 = sshll.u32 %s551_s9, 3  ;;  %s21_s9 = sadd.s32 1, %s551_s9  }
   0xe   : > { %233 = vmatpush1.bf16.msra.mxu0 %v473_v9  ;;  %276 = vmatpush1.bf16.msra.mxu1 %v491_v16  ;;  %v509_v33 = vld [vmem:[%s693_s1 + $0x28] ss:$16 sps:$4 sm:$0xff]   ;;  %v510_v34 = vld [vmem:[%s693_s1 + $0xc] ss:$16 sps:$4 sm:$0xff]   ;;  %v35_v35 = vpack.c.bf16 %v34_v32, %v33_v31  ;;  %v25_v37 = vld [vmem:[%s675_s23] sm:$0xff]  ;;  %s386_s27 = scalar_lea.vmem %s694_s2, %s449_s24  ;;  %p18_p0 = scmp.ge.s32.totalorder %s21_s9, 8  }
   0xf   : > { %234 = vmatprep.subr.bf16.mxu0 %v474_v10  ;;  %277 = vmatprep.subr.bf16.mxu1 %v494_v17  ;;  %v512_v36 = vld [vmem:[%s693_s1 + $0x8] ss:$16 sps:$4 sm:$0xff]   ;;  %v29_v42 = vld [vmem:[%s675_s23 + $0x20] sm:$0xff]  ;;  %v27_v57 = vld [vmem:[%s675_s23 + $0x10] sm:$0xff] }
  0x10   : > { %v26_v39 = vld [vmem:[%s675_s23 + $0x8] sm:$0xff]  ;;  %v32_v59 = vld [vmem:[%s675_s23 + $0x38] sm:$0xff]  ;;  %v31_v2 = vld [vmem:[%s675_s23 + $0x30] sm:$0xff] }
  0x11   : > { %v30_v46 = vld [vmem:[%s675_s23 + $0x28] sm:$0xff] }
  0x12   : > { %235 = vmatpush1.bf16.msra.mxu0 %v478_v13  ;;  %278 = vmatpush1.bf16.msra.mxu1 %v497_v20 }
  0x13   : > { %236 = vmatprep.subr.bf16.mxu0 %v480_v14  ;;  %279 = vmatprep.subr.bf16.mxu1 %v500_v21  ;;  %v360_v14 = vld [vmem:[#allocation3 + $0x8] sm:$0xff]  ;;  %v361_v21 = vld [vmem:[#allocation3] sm:$0xff] }
  0x16   : > { %237 = vmatpush1.bf16.msra.mxu0 %v484_v18  ;;  %280 = vmatpush1.bf16.msra.mxu1 %v503_v24 }
  0x17   : > { %238 = vmatprep.subr.bf16.mxu0 %v486_v19  ;;  %281 = vmatprep.subr.bf16.mxu1 %v504_v25 }
  0x1a   : > { %239 = vmatpush1.bf16.msra.mxu0 %v490_v22  ;;  %282 = vmatpush1.bf16.msra.mxu1 %v506_v28 }
  0x1b   : > { %240 = vmatprep.subr.bf16.mxu0 %v492_v23  ;;  %283 = vmatprep.subr.bf16.mxu1 %v507_v29 }
  0x1e   : > { %241 = vmatpush1.bf16.msra.mxu0 %v496_v26  ;;  %284 = vmatpush1.bf16.msra.mxu1 %v509_v33 }
  0x1f   : > { %242 = vmatprep.subr.bf16.mxu0 %v498_v27  ;;  %285 = vmatprep.subr.bf16.mxu1 %v510_v34 }
  0x22   : > { %243 = vmatpush1.bf16.msra.mxu0 %v502_v30  ;;  %286 = vmatpush1.bf16.msra.mxu1 %v512_v36 }
  0x25   : > { %261 = vmatmul.mubr.bf16.vlgmr.msra.gmra.mxu0 %v35_v35  ;;  %304 = vmatmul.mubr.bf16.vlgmr.msra.gmra.mxu1 %v35_v35 }
  0xe5   : > { %v262_v38 = vpop.f32.mrf.mxu0  ;;  %v305_v49 = vpop.f32.mrf.mxu1 }
  0xe6   : > { %v314_v40 = vadd.f32 %v262_v38, %v25_v37  ;;  %v316_v61 = vadd.f32 %v305_v49, %v27_v57 }
  0xe7   : > { %v264_v41 = vpop.f32.mrf.mxu0  ;;  %v307_v53 = vpop.f32.mrf.mxu1 }
  0xe8   : > { %v436_v43 = vmul.f32 -1.442695, %v314_v40  ;;  %v315_v44 = vadd.f32 %v264_v41, %v26_v39  ;;  %v317_v58 = vadd.f32 %v307_v53, %v28_v55 }
  0xe9   : > { %v266_v45 = vpop.f32.mrf.mxu0  ;;  %v309_v56 = vpop.f32.mrf.mxu1 }
  0xea   : > { %513 = vpow2.f32 %v436_v43  ;;  %v438_v47 = vmul.f32 -1.442695, %v315_v44  ;;  %v318_v48 = vadd.f32 %v266_v45, %v29_v42  ;;  %v440_v62 = vmul.f32 -1.442695, %v317_v58 }
  0xeb   : > { %v268_v50 = vpop.f32.mrf.mxu0  ;;  %v311_v60 = vpop.f32.mrf.mxu1  ;;  %v320_v7 = vadd.f32 %v309_v56, %v31_v2 }
  0xec   : > { %515 = vpow2.f32 %v438_v47  ;;  %v437_v51 = vmul.f32 -1.442695, %v318_v48  ;;  %v319_v52 = vadd.f32 %v268_v50, %v30_v46  ;;  %v321_v63 = vadd.f32 %v311_v60, %v32_v59 }
  0xee   : > { %517 = vpow2.f32 %v437_v51  ;;  %v439_v54 = vmul.f32 -1.442695, %v319_v52  ;;  %v441_v4 = vmul.f32 -1.442695, %v321_v63 }
  0xf0   : > { %519 = vpow2.f32 %v439_v54 }
  0xf1   : > { %521 = vtanh.f32 %v316_v61 }
  0xf2   : > { %523 = vpow2.f32 %v440_v62 }
  0xf7   : > { %v514_v0 = vpop.eup %513 }
  0xf8   : > { %v328_v1 = vadd.f32 1.0, %v514_v0 }
  0xf9   : > { %v516_v3 = vpop.eup %515 }
  0xfa   : > { %525 = vrcp.f32 %v328_v1  ;;  %v340_v5 = vadd.f32 1.0, %v516_v3 }
  0xfb   : > { %v518_v6 = vpop.eup %517 }
  0xfc   : > { %527 = vrcp.f32 %v340_v5  ;;  %v329_v8 = vadd.f32 1.0, %v518_v6 }
  0xfd   : > { %v520_v9 = vpop.eup %519  ;;  %529 = vpow2.f32 %v441_v4 }
  0xfe   : > { %531 = vrcp.f32 %v329_v8  ;;  %v341_v10 = vadd.f32 1.0, %v520_v9  ;;  %v522_v11 = vpop.eup %521 }
  0xff   : > { %533 = vtanh.f32 %v320_v7  ;;  %v524_v12 = vpop.eup %523 }
 0x100   : > { %535 = vrcp.f32 %v341_v10  ;;  %v354_v16 = vadd.f32 1.0, %v524_v12 }
 0x102   : > { %537 = vrcp.f32 %v354_v16 }
 0x107   : > { %v526_v13 = vpop.eup %525 }
 0x108   : > { %v364_v19 = vmul.f32 %v526_v13, %v522_v11 }
 0x109   : > { %v528_v15 = vpop.eup %527 }
 0x10a   : > { %v530_v17 = vpop.eup %529  ;;  %v362_v18 = vmul.f32 %v528_v15, %v360_v14 }
 0x10b   : > { %v532_v20 = vpop.eup %531  ;;  %v355_v25 = vadd.f32 1.0, %v530_v17 }
 0x10c   : > { %v534_v22 = vpop.eup %533  ;;  %v366_v23 = vadd.f32 %v364_v19, %v362_v18 }
 0x10d   : > { %v536_v24 = vpop.eup %535  ;;  %v365_v27 = vmul.f32 %v534_v22, %v532_v20 }
 0x10e   : > { %539 = vtanh.f32 %v366_v23  ;;  %372 = vst [vmem:[#allocation3 + $0x8] sm:$0xff] %v366_v23  ;;  %v363_v26 = vmul.f32 %v536_v24, %v361_v21 }
 0x10f   : > { %541 = vrcp.f32 %v355_v25  ;;  %v538_v29 = vpop.eup %537 }
 0x110   : > { %v367_v28 = vadd.f32 %v365_v27, %v363_v26 }
 0x112   : > { %543 = vtanh.f32 %v367_v28  ;;  %373 = vst [vmem:[#allocation3] sm:$0xff] %v367_v28 }
 0x11b   : > { %v540_v30 = vpop.eup %539 }
 0x11c   : > { %v370_v31 = vmul.f32 %v540_v30, %v538_v29  ;;  %v542_v32 = vpop.eup %541 }
 0x11e   : > { %374 = vst [vmem:[#allocation2] sm:$0xff] %v370_v31 }
 0x11f   : > { %v544_v33 = vpop.eup %543 }
 0x120   : > { %v371_v34 = vmul.f32 %v544_v33, %v542_v32  ;;  %20 = sbr.rel (!%p18_p0) target bundleno = 3 (0x3), region = 37 }
 0x122   : > { %375 = vst [vmem:[#allocation2 + $0x8] sm:$0xff] %v371_v34  ;;  %v453_v35 = vpack.c.bf16 %v371_v34, %v370_v31 }
 0x124   : > { %454 = vst [vmem:[%s386_s27] sm:$0xff] %v453_v35  }

// kernel: rnn_decoder_forward.5
= control target key start
LH: loop header
LB: loop body
LE: loop exit
PB: predicated region body
PF: predicated region fallthrough
CT: control target
= control target key end

     0   :  { %v409_v1 = vmov 0   ;;  %v49_v25 = vlaneseq  ;;  %s645_s1 = inlined_call_operand.vmem [shape: bf16[128,256], index: 1, kind: input, shape index: {}]   ;;  %s646_s0 = inlined_call_operand.vmem [shape: bf16[128,128], index: 0, kind: input, shape index: {}]   ;;  %s647_s2 = inlined_call_operand.vmem [shape: f32[1,256], index: 2, kind: input, shape index: {}]   ;;  %s648_s3 = inlined_call_operand.vmem [shape: f32[128,256], index: 3, kind: output, shape index: {}]  }
   0x1   :  { %v377_v0 = vld [vmem:[%s645_s1 + $0x74] ss:$8 sps:$4 sm:$0xff]   ;;  %219 = vmatprep.mubr.bf16.mxu0 %v409_v1  ;;  %259 = vmatprep.mubr.bf16.mxu1 %v409_v1  ;;  %v379_v2 = vld [vmem:[%s645_s1 + $0x70] ss:$8 sps:$4 sm:$0xff]   ;;  %v380_v3 = vld [vmem:[%s645_s1 + $0x64] ss:$8 sps:$4 sm:$0xff]  }
   0x2   :  { %187 = vmatprep.subr.bf16.mxu0 %v377_v0  ;;  %360 = vmatprep.subr.bf16.mxu1 %v377_v0  ;;  %v382_v4 = vld [vmem:[%s645_s1 + $0x60] ss:$8 sps:$4 sm:$0xff]   ;;  %v383_v5 = vld [vmem:[%s645_s1 + $0x54] ss:$8 sps:$4 sm:$0xff]   ;;  %v385_v6 = vld [vmem:[%s645_s1 + $0x50] ss:$8 sps:$4 sm:$0xff]  }
   0x3   :  { %188 = vmatpush1.bf16.msra.mxu0 %v379_v2  ;;  %368 = vmatpush1.bf16.msra.mxu1 %v379_v2  ;;  %v386_v7 = vld [vmem:[%s645_s1 + $0x44] ss:$8 sps:$4 sm:$0xff]   ;;  %v388_v8 = vld [vmem:[%s645_s1 + $0x40] ss:$8 sps:$4 sm:$0xff]   ;;  %v389_v9 = vld [vmem:[%s645_s1 + $0x34] ss:$8 sps:$4 sm:$0xff]  }
   0x4   :  { %189 = vmatprep.subr.bf16.mxu0 %v380_v3  ;;  %361 = vmatprep.subr.bf16.mxu1 %v380_v3  ;;  %v391_v10 = vld [vmem:[%s645_s1 + $0x30] ss:$8 sps:$4 sm:$0xff]   ;;  %v392_v11 = vld [vmem:[%s645_s1 + $0x24] ss:$8 sps:$4 sm:$0xff]   ;;  %v394_v12 = vld [vmem:[%s645_s1 + $0x20] ss:$8 sps:$4 sm:$0xff]  }
   0x5   :  { %v395_v13 = vld [vmem:[%s645_s1 + $0x14] ss:$8 sps:$4 sm:$0xff]   ;;  %v397_v14 = vld [vmem:[%s645_s1 + $0x10] ss:$8 sps:$4 sm:$0xff]   ;;  %v398_v15 = vld [vmem:[%s645_s1 + $0x4] ss:$8 sps:$4 sm:$0xff]  }
   0x6   :  { %v400_v16 = vld [vmem:[%s645_s1] ss:$8 sps:$4 sm:$0xff]   ;;  %v405_v21 = vld [vmem:[%s646_s0 + $0x10] sm:$0xff]   ;;  %v407_v23 = vld [vmem:[%s646_s0 + $0x18] sm:$0xff]   ;;  %v50_v26 = vshrl.u32 %v49_v25, 7 }
   0x7   :  { %190 = vmatpush1.bf16.msra.mxu0 %v382_v4  ;;  %369 = vmatpush1.bf16.msra.mxu1 %v382_v4  ;;  %v401_v17 = vld [vmem:[%s646_s0] sm:$0xff]   ;;  %v403_v19 = vld [vmem:[%s646_s0 + $0x8] sm:$0xff]   ;;  %v406_v22 = vld [vmem:[%s646_s0 + $0x30] sm:$0xff]  }
   0x8   :  { %191 = vmatprep.subr.bf16.mxu0 %v383_v5  ;;  %362 = vmatprep.subr.bf16.mxu1 %v383_v5  ;;  %v402_v18 = vld [vmem:[%s646_s0 + $0x20] sm:$0xff]   ;;  %v404_v20 = vld [vmem:[%s646_s0 + $0x28] sm:$0xff]   ;;  %v408_v24 = vld [vmem:[%s646_s0 + $0x38] sm:$0xff]   ;;  %v51_v27 = vsub.s32 0, %v50_v26  ;;  %v55_v29 = vsub.s32 1, %v50_v26 }
   0x9   :  { %v47_v28 = vld [vmem:[%s647_s2] sm:$0x3] }
   0xa   :  { %v513_v30 = vrot.slane %v47_v28, %v51_v27  ;;  %v515_v31 = vrot.slane %v47_v28, %v55_v29 }
   0xb   :  { %192 = vmatpush1.bf16.msra.mxu0 %v385_v6  ;;  %370 = vmatpush1.bf16.msra.mxu1 %v385_v6 }
   0xc   :  { %193 = vmatprep.subr.bf16.mxu0 %v386_v7  ;;  %363 = vmatprep.subr.bf16.mxu1 %v386_v7 }
   0xf   :  { %194 = vmatpush1.bf16.msra.mxu0 %v388_v8  ;;  %371 = vmatpush1.bf16.msra.mxu1 %v388_v8 }
  0x10   :  { %195 = vmatprep.subr.bf16.mxu0 %v389_v9  ;;  %364 = vmatprep.subr.bf16.mxu1 %v389_v9 }
  0x13   :  { %196 = vmatpush1.bf16.msra.mxu0 %v391_v10  ;;  %372 = vmatpush1.bf16.msra.mxu1 %v391_v10 }
  0x14   :  { %197 = vmatprep.subr.bf16.mxu0 %v392_v11  ;;  %365 = vmatprep.subr.bf16.mxu1 %v392_v11 }
  0x17   :  { %198 = vmatpush1.bf16.msra.mxu0 %v394_v12  ;;  %373 = vmatpush1.bf16.msra.mxu1 %v394_v12 }
  0x18   :  { %199 = vmatprep.subr.bf16.mxu0 %v395_v13  ;;  %366 = vmatprep.subr.bf16.mxu1 %v395_v13 }
  0x1b   :  { %200 = vmatpush1.bf16.msra.mxu0 %v397_v14  ;;  %374 = vmatpush1.bf16.msra.mxu1 %v397_v14 }
  0x1c   :  { %201 = vmatprep.subr.bf16.mxu0 %v398_v15  ;;  %367 = vmatprep.subr.bf16.mxu1 %v398_v15 }
  0x1f   :  { %202 = vmatpush1.bf16.msra.mxu0 %v400_v16  ;;  %375 = vmatpush1.bf16.msra.mxu1 %v400_v16 }
  0x22   :  { %220 = vmatmul.mubr.bf16.vlgmr.msra.gmra.mxu0 %v401_v17  ;;  %260 = vmatmul.mubr.bf16.vlgmr.msra.gmra.mxu1 %v402_v18 }
  0x23   :  { %229 = vmatprep.mubr.bf16.mxu0 %v409_v1  ;;  %269 = vmatprep.mubr.bf16.mxu1 %v409_v1 }
  0x2a   :  { %230 = vmatmul.mubr.bf16.gmra.mxu0 %v403_v19  ;;  %270 = vmatmul.mubr.bf16.gmra.mxu1 %v404_v20 }
  0x2b   :  { %239 = vmatprep.mubr.bf16.mxu0 %v409_v1  ;;  %279 = vmatprep.mubr.bf16.mxu1 %v409_v1 }
  0x32   :  { %240 = vmatmul.mubr.bf16.gmra.mxu0 %v405_v21  ;;  %280 = vmatmul.mubr.bf16.gmra.mxu1 %v406_v22 }
  0x33   :  { %249 = vmatprep.mubr.bf16.mxu0 %v409_v1  ;;  %289 = vmatprep.mubr.bf16.mxu1 %v409_v1 }
  0x3a   :  { %250 = vmatmul.mubr.bf16.gmra.mxu0 %v407_v23  ;;  %290 = vmatmul.mubr.bf16.gmra.mxu1 %v408_v24 }
  0xe2   :  { %v221_v32 = vpop.f32.mrf.mxu0  ;;  %v261_v33 = vpop.f32.mrf.mxu1 }
  0xe3   :  { %v222_v34 = vadd.f32 %v221_v32, %v513_v30  ;;  %v262_v35 = vadd.f32 %v261_v33, %v513_v30 }
  0xe4   :  { %v223_v36 = vpop.f32.mrf.mxu0  ;;  %v263_v37 = vpop.f32.mrf.mxu1 }
  0xe5   :  { %300 = vst [vmem:[%s648_s3] sm:$0xff] %v222_v34  ;;  %316 = vst [vmem:[%s648_s3 + $0x80] sm:$0xff] %v262_v35  ;;  %v224_v38 = vadd.f32 %v223_v36, %v515_v31  ;;  %v264_v39 = vadd.f32 %v263_v37, %v515_v31 }
  0xe6   :  { %v225_v40 = vpop.f32.mrf.mxu0  ;;  %v265_v41 = vpop.f32.mrf.mxu1 }
  0xe7   :  { %301 = vst [vmem:[%s648_s3 + $0x8] sm:$0xff] %v224_v38  ;;  %317 = vst [vmem:[%s648_s3 + $0x88] sm:$0xff] %v264_v39  ;;  %v226_v42 = vadd.f32 %v225_v40, %v513_v30  ;;  %v266_v43 = vadd.f32 %v265_v41, %v513_v30 }
  0xe8   :  { %v227_v44 = vpop.f32.mrf.mxu0  ;;  %v267_v45 = vpop.f32.mrf.mxu1 }
  0xe9   :  { %302 = vst [vmem:[%s648_s3 + $0x10] sm:$0xff] %v226_v42  ;;  %318 = vst [vmem:[%s648_s3 + $0x90] sm:$0xff] %v266_v43  ;;  %v228_v46 = vadd.f32 %v227_v44, %v515_v31  ;;  %v268_v47 = vadd.f32 %v267_v45, %v515_v31 }
  0xea   :  { %v231_v48 = vpop.f32.mrf.mxu0  ;;  %v271_v49 = vpop.f32.mrf.mxu1 }
  0xeb   :  { %303 = vst [vmem:[%s648_s3 + $0x18] sm:$0xff] %v228_v46  ;;  %319 = vst [vmem:[%s648_s3 + $0x98] sm:$0xff] %v268_v47  ;;  %v232_v50 = vadd.f32 %v231_v48, %v513_v30  ;;  %v272_v51 = vadd.f32 %v271_v49, %v513_v30 }
  0xec   :  { %v233_v52 = vpop.f32.mrf.mxu0  ;;  %v273_v53 = vpop.f32.mrf.mxu1 }
  0xed   :  { %304 = vst [vmem:[%s648_s3 + $0x20] sm:$0xff] %v232_v50  ;;  %320 = vst [vmem:[%s648_s3 + $0xa0] sm:$0xff] %v272_v51  ;;  %v234_v54 = vadd.f32 %v233_v52, %v515_v31  ;;  %v274_v55 = vadd.f32 %v273_v53, %v515_v31 }
  0xee   :  { %v235_v56 = vpop.f32.mrf.mxu0  ;;  %v275_v57 = vpop.f32.mrf.mxu1 }
  0xef   :  { %305 = vst [vmem:[%s648_s3 + $0x28] sm:$0xff] %v234_v54  ;;  %321 = vst [vmem:[%s648_s3 + $0xa8] sm:$0xff] %v274_v55  ;;  %v236_v58 = vadd.f32 %v235_v56, %v513_v30  ;;  %v276_v59 = vadd.f32 %v275_v57, %v513_v30 }
  0xf0   :  { %v237_v60 = vpop.f32.mrf.mxu0  ;;  %v277_v61 = vpop.f32.mrf.mxu1 }
  0xf1   :  { %306 = vst [vmem:[%s648_s3 + $0x30] sm:$0xff] %v236_v58  ;;  %322 = vst [vmem:[%s648_s3 + $0xb0] sm:$0xff] %v276_v59  ;;  %v238_v62 = vadd.f32 %v237_v60, %v515_v31  ;;  %v278_v63 = vadd.f32 %v277_v61, %v515_v31 }
  0xf2   :  { %v241_v0 = vpop.f32.mrf.mxu0  ;;  %v281_v1 = vpop.f32.mrf.mxu1 }
  0xf3   :  { %307 = vst [vmem:[%s648_s3 + $0x38] sm:$0xff] %v238_v62  ;;  %323 = vst [vmem:[%s648_s3 + $0xb8] sm:$0xff] %v278_v63  ;;  %v242_v2 = vadd.f32 %v241_v0, %v513_v30  ;;  %v282_v3 = vadd.f32 %v281_v1, %v513_v30 }
  0xf4   :  { %v243_v4 = vpop.f32.mrf.mxu0  ;;  %v283_v5 = vpop.f32.mrf.mxu1 }
  0xf5   :  { %308 = vst [vmem:[%s648_s3 + $0x40] sm:$0xff] %v242_v2  ;;  %324 = vst [vmem:[%s648_s3 + $0xc0] sm:$0xff] %v282_v3  ;;  %v244_v6 = vadd.f32 %v243_v4, %v515_v31  ;;  %v284_v7 = vadd.f32 %v283_v5, %v515_v31 }
  0xf6   :  { %v245_v8 = vpop.f32.mrf.mxu0  ;;  %v285_v9 = vpop.f32.mrf.mxu1 }
  0xf7   :  { %309 = vst [vmem:[%s648_s3 + $0x48] sm:$0xff] %v244_v6  ;;  %325 = vst [vmem:[%s648_s3 + $0xc8] sm:$0xff] %v284_v7  ;;  %v246_v10 = vadd.f32 %v245_v8, %v513_v30  ;;  %v286_v11 = vadd.f32 %v285_v9, %v513_v30 }
  0xf8   :  { %v247_v12 = vpop.f32.mrf.mxu0  ;;  %v287_v13 = vpop.f32.mrf.mxu1 }
  0xf9   :  { %310 = vst [vmem:[%s648_s3 + $0x50] sm:$0xff] %v246_v10  ;;  %326 = vst [vmem:[%s648_s3 + $0xd0] sm:$0xff] %v286_v11  ;;  %v248_v14 = vadd.f32 %v247_v12, %v515_v31  ;;  %v288_v15 = vadd.f32 %v287_v13, %v515_v31 }
  0xfa   :  { %v251_v16 = vpop.f32.mrf.mxu0  ;;  %v291_v17 = vpop.f32.mrf.mxu1 }
  0xfb   :  { %311 = vst [vmem:[%s648_s3 + $0x58] sm:$0xff] %v248_v14  ;;  %327 = vst [vmem:[%s648_s3 + $0xd8] sm:$0xff] %v288_v15  ;;  %v252_v18 = vadd.f32 %v251_v16, %v513_v30  ;;  %v292_v19 = vadd.f32 %v291_v17, %v513_v30 }
  0xfc   :  { %v253_v20 = vpop.f32.mrf.mxu0  ;;  %v293_v21 = vpop.f32.mrf.mxu1 }
  0xfd   :  { %312 = vst [vmem:[%s648_s3 + $0x60] sm:$0xff] %v252_v18  ;;  %328 = vst [vmem:[%s648_s3 + $0xe0] sm:$0xff] %v292_v19  ;;  %v254_v22 = vadd.f32 %v253_v20, %v515_v31  ;;  %v294_v23 = vadd.f32 %v293_v21, %v515_v31 }
  0xfe   :  { %v255_v24 = vpop.f32.mrf.mxu0  ;;  %v295_v25 = vpop.f32.mrf.mxu1 }
  0xff   :  { %313 = vst [vmem:[%s648_s3 + $0x68] sm:$0xff] %v254_v22  ;;  %329 = vst [vmem:[%s648_s3 + $0xe8] sm:$0xff] %v294_v23  ;;  %v256_v26 = vadd.f32 %v255_v24, %v513_v30  ;;  %v296_v27 = vadd.f32 %v295_v25, %v513_v30 }
 0x100   :  { %v257_v28 = vpop.f32.mrf.mxu0  ;;  %v297_v29 = vpop.f32.mrf.mxu1 }
 0x101   :  { %314 = vst [vmem:[%s648_s3 + $0x70] sm:$0xff] %v256_v26  ;;  %330 = vst [vmem:[%s648_s3 + $0xf0] sm:$0xff] %v296_v27  ;;  %v258_v32 = vadd.f32 %v257_v28, %v515_v31  ;;  %v298_v33 = vadd.f32 %v297_v29, %v515_v31 }
 0x103   :  { %315 = vst [vmem:[%s648_s3 + $0x78] sm:$0xff] %v258_v32  ;;  %331 = vst [vmem:[%s648_s3 + $0xf8] sm:$0xff] %v298_v33 }

// kernel: rnn_decoder_forward.3
= control target key start
LH: loop header
LB: loop body
LE: loop exit
PB: predicated region body
PF: predicated region fallthrough
CT: control target
= control target key end

     0   :  { %v684_v1 = vmov 0   ;;  %v65_v41 = vlaneseq  ;;  %s1108_s1 = inlined_call_operand.vmem [shape: bf16[128,512], index: 1, kind: input, shape index: {}]   ;;  %s1109_s0 = inlined_call_operand.vmem [shape: bf16[128,128], index: 0, kind: input, shape index: {}]   ;;  %s1110_s2 = inlined_call_operand.vmem [shape: f32[1,512], index: 2, kind: input, shape index: {}]   ;;  %s1111_s3 = inlined_call_operand.vmem [shape: f32[128,512], index: 3, kind: output, shape index: {}]  }
   0x1   :  { %v628_v0 = vld [vmem:[%s1108_s1 + $0xe4] ss:$16 sps:$4 sm:$0xff]   ;;  %325 = vmatprep.mubr.bf16.mxu0 %v684_v1  ;;  %438 = vmatprep.mubr.bf16.mxu1 %v684_v1  ;;  %v630_v2 = vld [vmem:[%s1108_s1 + $0xec] ss:$16 sps:$4 sm:$0xff]   ;;  %v632_v3 = vld [vmem:[%s1108_s1 + $0xe0] ss:$16 sps:$4 sm:$0xff]  }
   0x2   :  { %293 = vmatprep.subr.bf16.mxu0 %v628_v0  ;;  %v633_v4 = vld [vmem:[%s1108_s1 + $0xe8] ss:$16 sps:$4 sm:$0xff]   ;;  %406 = vmatprep.subr.bf16.mxu1 %v630_v2  ;;  %v634_v5 = vld [vmem:[%s1108_s1 + $0xc4] ss:$16 sps:$4 sm:$0xff]   ;;  %v636_v6 = vld [vmem:[%s1108_s1 + $0xcc] ss:$16 sps:$4 sm:$0xff]  }
   0x3   :  { %294 = vmatpush1.bf16.msra.mxu0 %v632_v3  ;;  %407 = vmatpush1.bf16.msra.mxu1 %v633_v4  ;;  %v638_v7 = vld [vmem:[%s1108_s1 + $0xc0] ss:$16 sps:$4 sm:$0xff]   ;;  %v639_v8 = vld [vmem:[%s1108_s1 + $0xc8] ss:$16 sps:$4 sm:$0xff]   ;;  %v640_v9 = vld [vmem:[%s1108_s1 + $0xa4] ss:$16 sps:$4 sm:$0xff]  }
   0x4   :  { %295 = vmatprep.subr.bf16.mxu0 %v634_v5  ;;  %408 = vmatprep.subr.bf16.mxu1 %v636_v6  ;;  %v642_v10 = vld [vmem:[%s1108_s1 + $0xac] ss:$16 sps:$4 sm:$0xff]   ;;  %v644_v11 = vld [vmem:[%s1108_s1 + $0xa0] ss:$16 sps:$4 sm:$0xff]   ;;  %v645_v12 = vld [vmem:[%s1108_s1 + $0xa8] ss:$16 sps:$4 sm:$0xff]  }
   0x5   :  { %v646_v13 = vld [vmem:[%s1108_s1 + $0x84] ss:$16 sps:$4 sm:$0xff]   ;;  %v648_v14 = vld [vmem:[%s1108_s1 + $0x8c] ss:$16 sps:$4 sm:$0xff]   ;;  %v650_v15 = vld [vmem:[%s1108_s1 + $0x80] ss:$16 sps:$4 sm:$0xff]  }
   0x6   :  { %v651_v16 = vld [vmem:[%s1108_s1 + $0x88] ss:$16 sps:$4 sm:$0xff]   ;;  %v652_v17 = vld [vmem:[%s1108_s1 + $0x64] ss:$16 sps:$4 sm:$0xff]   ;;  %v654_v18 = vld [vmem:[%s1108_s1 + $0x6c] ss:$16 sps:$4 sm:$0xff]  }
   0x7   :  { %296 = vmatpush1.bf16.msra.mxu0 %v638_v7  ;;  %409 = vmatpush1.bf16.msra.mxu1 %v639_v8  ;;  %v656_v19 = vld [vmem:[%s1108_s1 + $0x60] ss:$16 sps:$4 sm:$0xff]   ;;  %v657_v20 = vld [vmem:[%s1108_s1 + $0x68] ss:$16 sps:$4 sm:$0xff]   ;;  %v658_v21 = vld [vmem:[%s1108_s1 + $0x44] ss:$16 sps:$4 sm:$0xff]  }
   0x8   :  { %297 = vmatprep.subr.bf16.mxu0 %v640_v9  ;;  %410 = vmatprep.subr.bf16.mxu1 %v642_v10  ;;  %v660_v22 = vld [vmem:[%s1108_s1 + $0x4c] ss:$16 sps:$4 sm:$0xff]   ;;  %v662_v23 = vld [vmem:[%s1108_s1 + $0x40] ss:$16 sps:$4 sm:$0xff]   ;;  %v663_v24 = vld [vmem:[%s1108_s1 + $0x48] ss:$16 sps:$4 sm:$0xff]  }
   0x9   :  { %v664_v25 = vld [vmem:[%s1108_s1 + $0x24] ss:$16 sps:$4 sm:$0xff]   ;;  %v666_v26 = vld [vmem:[%s1108_s1 + $0x2c] ss:$16 sps:$4 sm:$0xff]   ;;  %v668_v27 = vld [vmem:[%s1108_s1 + $0x20] ss:$16 sps:$4 sm:$0xff]  }
   0xa   :  { %v669_v28 = vld [vmem:[%s1108_s1 + $0x28] ss:$16 sps:$4 sm:$0xff]   ;;  %v670_v29 = vld [vmem:[%s1108_s1 + $0x4] ss:$16 sps:$4 sm:$0xff]   ;;  %v672_v30 = vld [vmem:[%s1108_s1 + $0xc] ss:$16 sps:$4 sm:$0xff]  }
   0xb   :  { %298 = vmatpush1.bf16.msra.mxu0 %v644_v11  ;;  %411 = vmatpush1.bf16.msra.mxu1 %v645_v12  ;;  %v674_v31 = vld [vmem:[%s1108_s1] ss:$16 sps:$4 sm:$0xff]   ;;  %v675_v32 = vld [vmem:[%s1108_s1 + $0x8] ss:$16 sps:$4 sm:$0xff]   ;;  %v66_v42 = vshrl.u32 %v65_v41, 7 }
   0xc   :  { %299 = vmatprep.subr.bf16.mxu0 %v646_v13  ;;  %412 = vmatprep.subr.bf16.mxu1 %v648_v14  ;;  %v676_v33 = vld [vmem:[%s1109_s0] sm:$0xff]   ;;  %v677_v34 = vld [vmem:[%s1109_s0 + $0x8] sm:$0xff]   ;;  %v678_v35 = vld [vmem:[%s1109_s0 + $0x10] sm:$0xff]  }
   0xd   :  { %v679_v36 = vld [vmem:[%s1109_s0 + $0x18] sm:$0xff]   ;;  %v680_v37 = vld [vmem:[%s1109_s0 + $0x20] sm:$0xff]   ;;  %v681_v38 = vld [vmem:[%s1109_s0 + $0x28] sm:$0xff]   ;;  %v67_v43 = vsub.s32 0, %v66_v42  ;;  %v75_v44 = vsub.s32 2, %v66_v42  ;;  %v71_v46 = vsub.s32 1, %v66_v42 }
   0xe   :  { %v682_v39 = vld [vmem:[%s1109_s0 + $0x30] sm:$0xff]   ;;  %v683_v40 = vld [vmem:[%s1109_s0 + $0x38] sm:$0xff]   ;;  %v63_v45 = vld [vmem:[%s1110_s2] sm:$0xf]  ;;  %v79_v47 = vsub.s32 3, %v66_v42 }
   0xf   :  { %300 = vmatpush1.bf16.msra.mxu0 %v650_v15  ;;  %413 = vmatpush1.bf16.msra.mxu1 %v651_v16  ;;  %v844_v48 = vrot.slane %v63_v45, %v67_v43  ;;  %v846_v49 = vrot.slane %v63_v45, %v75_v44  ;;  %v848_v50 = vrot.slane %v63_v45, %v71_v46 }
  0x10   :  { %301 = vmatprep.subr.bf16.mxu0 %v652_v17  ;;  %414 = vmatprep.subr.bf16.mxu1 %v654_v18  ;;  %v850_v51 = vrot.slane %v63_v45, %v79_v47 }
  0x13   :  { %302 = vmatpush1.bf16.msra.mxu0 %v656_v19  ;;  %415 = vmatpush1.bf16.msra.mxu1 %v657_v20 }
  0x14   :  { %303 = vmatprep.subr.bf16.mxu0 %v658_v21  ;;  %416 = vmatprep.subr.bf16.mxu1 %v660_v22 }
  0x17   :  { %304 = vmatpush1.bf16.msra.mxu0 %v662_v23  ;;  %417 = vmatpush1.bf16.msra.mxu1 %v663_v24 }
  0x18   :  { %305 = vmatprep.subr.bf16.mxu0 %v664_v25  ;;  %418 = vmatprep.subr.bf16.mxu1 %v666_v26 }
  0x1b   :  { %306 = vmatpush1.bf16.msra.mxu0 %v668_v27  ;;  %419 = vmatpush1.bf16.msra.mxu1 %v669_v28 }
  0x1c   :  { %307 = vmatprep.subr.bf16.mxu0 %v670_v29  ;;  %420 = vmatprep.subr.bf16.mxu1 %v672_v30 }
  0x1f   :  { %308 = vmatpush1.bf16.msra.mxu0 %v674_v31  ;;  %421 = vmatpush1.bf16.msra.mxu1 %v675_v32 }
  0x22   :  { %326 = vmatmul.mubr.bf16.vlgmr.msra.gmra.mxu0 %v676_v33  ;;  %439 = vmatmul.mubr.bf16.vlgmr.msra.gmra.mxu1 %v676_v33 }
  0x23   :  { %335 = vmatprep.mubr.bf16.mxu0 %v684_v1  ;;  %448 = vmatprep.mubr.bf16.mxu1 %v684_v1 }
  0x2a   :  { %336 = vmatmul.mubr.bf16.gmra.mxu0 %v677_v34  ;;  %449 = vmatmul.mubr.bf16.gmra.mxu1 %v677_v34 }
  0x2b   :  { %345 = vmatprep.mubr.bf16.mxu0 %v684_v1  ;;  %458 = vmatprep.mubr.bf16.mxu1 %v684_v1 }
  0x32   :  { %346 = vmatmul.mubr.bf16.gmra.mxu0 %v678_v35  ;;  %459 = vmatmul.mubr.bf16.gmra.mxu1 %v678_v35 }
  0x33   :  { %355 = vmatprep.mubr.bf16.mxu0 %v684_v1  ;;  %468 = vmatprep.mubr.bf16.mxu1 %v684_v1 }
  0x3a   :  { %356 = vmatmul.mubr.bf16.gmra.mxu0 %v679_v36  ;;  %469 = vmatmul.mubr.bf16.gmra.mxu1 %v679_v36 }
  0x3b   :  { %365 = vmatprep.mubr.bf16.mxu0 %v684_v1  ;;  %478 = vmatprep.mubr.bf16.mxu1 %v684_v1 }
  0x42   :  { %366 = vmatmul.mubr.bf16.gmra.mxu0 %v680_v37  ;;  %479 = vmatmul.mubr.bf16.gmra.mxu1 %v680_v37 }
  0x43   :  { %375 = vmatprep.mubr.bf16.mxu0 %v684_v1  ;;  %488 = vmatprep.mubr.bf16.mxu1 %v684_v1 }
  0x4a   :  { %376 = vmatmul.mubr.bf16.gmra.mxu0 %v681_v38  ;;  %489 = vmatmul.mubr.bf16.gmra.mxu1 %v681_v38 }
  0x4b   :  { %385 = vmatprep.mubr.bf16.mxu0 %v684_v1  ;;  %498 = vmatprep.mubr.bf16.mxu1 %v684_v1 }
  0x52   :  { %386 = vmatmul.mubr.bf16.gmra.mxu0 %v682_v39  ;;  %499 = vmatmul.mubr.bf16.gmra.mxu1 %v682_v39 }
  0x53   :  { %395 = vmatprep.mubr.bf16.mxu0 %v684_v1  ;;  %508 = vmatprep.mubr.bf16.mxu1 %v684_v1 }
  0x5a   :  { %396 = vmatmul.mubr.bf16.gmra.mxu0 %v683_v40  ;;  %509 = vmatmul.mubr.bf16.gmra.mxu1 %v683_v40 }
  0xe2   :  { %v327_v52 = vpop.f32.mrf.mxu0  ;;  %v440_v53 = vpop.f32.mrf.mxu1 }
  0xe3   :  { %v328_v54 = vadd.f32 %v327_v52, %v844_v48  ;;  %v441_v55 = vadd.f32 %v440_v53, %v846_v49 }
  0xe4   :  { %v329_v56 = vpop.f32.mrf.mxu0  ;;  %v442_v57 = vpop.f32.mrf.mxu1 }
  0xe5   :  { %519 = vst [vmem:[%s1111_s3] sm:$0xff] %v328_v54  ;;  %521 = vst [vmem:[%s1111_s3 + $0x10] sm:$0xff] %v441_v55  ;;  %v330_v58 = vadd.f32 %v329_v56, %v848_v50  ;;  %v443_v59 = vadd.f32 %v442_v57, %v850_v51 }
  0xe6   :  { %v331_v60 = vpop.f32.mrf.mxu0  ;;  %v444_v61 = vpop.f32.mrf.mxu1 }
  0xe7   :  { %520 = vst [vmem:[%s1111_s3 + $0x8] sm:$0xff] %v330_v58  ;;  %522 = vst [vmem:[%s1111_s3 + $0x18] sm:$0xff] %v443_v59  ;;  %v332_v62 = vadd.f32 %v331_v60, %v844_v48  ;;  %v445_v63 = vadd.f32 %v444_v61, %v846_v49 }
  0xe8   :  { %v333_v0 = vpop.f32.mrf.mxu0  ;;  %v446_v1 = vpop.f32.mrf.mxu1 }
  0xe9   :  { %523 = vst [vmem:[%s1111_s3 + $0x20] sm:$0xff] %v332_v62  ;;  %525 = vst [vmem:[%s1111_s3 + $0x30] sm:$0xff] %v445_v63  ;;  %v334_v2 = vadd.f32 %v333_v0, %v848_v50  ;;  %v447_v3 = vadd.f32 %v446_v1, %v850_v51 }
  0xea   :  { %v337_v4 = vpop.f32.mrf.mxu0  ;;  %v450_v5 = vpop.f32.mrf.mxu1 }
  0xeb   :  { %524 = vst [vmem:[%s1111_s3 + $0x28] sm:$0xff] %v334_v2  ;;  %526 = vst [vmem:[%s1111_s3 + $0x38] sm:$0xff] %v447_v3  ;;  %v338_v6 = vadd.f32 %v337_v4, %v844_v48  ;;  %v451_v7 = vadd.f32 %v450_v5, %v846_v49 }
  0xec   :  { %v339_v8 = vpop.f32.mrf.mxu0  ;;  %v452_v9 = vpop.f32.mrf.mxu1 }
  0xed   :  { %527 = vst [vmem:[%s1111_s3 + $0x40] sm:$0xff] %v338_v6  ;;  %529 = vst [vmem:[%s1111_s3 + $0x50] sm:$0xff] %v451_v7  ;;  %v340_v10 = vadd.f32 %v339_v8, %v848_v50  ;;  %v453_v11 = vadd.f32 %v452_v9, %v850_v51 }
  0xee   :  { %v341_v12 = vpop.f32.mrf.mxu0  ;;  %v454_v13 = vpop.f32.mrf.mxu1 }
  0xef   :  { %528 = vst [vmem:[%s1111_s3 + $0x48] sm:$0xff] %v340_v10  ;;  %530 = vst [vmem:[%s1111_s3 + $0x58] sm:$0xff] %v453_v11  ;;  %v342_v14 = vadd.f32 %v341_v12, %v844_v48  ;;  %v455_v15 = vadd.f32 %v454_v13, %v846_v49 }
  0xf0   :  { %v343_v16 = vpop.f32.mrf.mxu0  ;;  %v456_v17 = vpop.f32.mrf.mxu1 }
  0xf1   :  { %531 = vst [vmem:[%s1111_s3 + $0x60] sm:$0xff] %v342_v14  ;;  %533 = vst [vmem:[%s1111_s3 + $0x70] sm:$0xff] %v455_v15  ;;  %v344_v18 = vadd.f32 %v343_v16, %v848_v50  ;;  %v457_v19 = vadd.f32 %v456_v17, %v850_v51 }
  0xf2   :  { %v347_v20 = vpop.f32.mrf.mxu0  ;;  %v460_v21 = vpop.f32.mrf.mxu1 }
  0xf3   :  { %532 = vst [vmem:[%s1111_s3 + $0x68] sm:$0xff] %v344_v18  ;;  %534 = vst [vmem:[%s1111_s3 + $0x78] sm:$0xff] %v457_v19  ;;  %v348_v22 = vadd.f32 %v347_v20, %v844_v48  ;;  %v461_v23 = vadd.f32 %v460_v21, %v846_v49 }
  0xf4   :  { %v349_v24 = vpop.f32.mrf.mxu0  ;;  %v462_v25 = vpop.f32.mrf.mxu1 }
  0xf5   :  { %535 = vst [vmem:[%s1111_s3 + $0x80] sm:$0xff] %v348_v22  ;;  %537 = vst [vmem:[%s1111_s3 + $0x90] sm:$0xff] %v461_v23  ;;  %v350_v26 = vadd.f32 %v349_v24, %v848_v50  ;;  %v463_v27 = vadd.f32 %v462_v25, %v850_v51 }
  0xf6   :  { %v351_v28 = vpop.f32.mrf.mxu0  ;;  %v464_v29 = vpop.f32.mrf.mxu1 }
  0xf7   :  { %536 = vst [vmem:[%s1111_s3 + $0x88] sm:$0xff] %v350_v26  ;;  %538 = vst [vmem:[%s1111_s3 + $0x98] sm:$0xff] %v463_v27  ;;  %v352_v30 = vadd.f32 %v351_v28, %v844_v48  ;;  %v465_v31 = vadd.f32 %v464_v29, %v846_v49 }
  0xf8   :  { %v353_v32 = vpop.f32.mrf.mxu0  ;;  %v466_v33 = vpop.f32.mrf.mxu1 }
  0xf9   :  { %539 = vst [vmem:[%s1111_s3 + $0xa0] sm:$0xff] %v352_v30  ;;  %541 = vst [vmem:[%s1111_s3 + $0xb0] sm:$0xff] %v465_v31  ;;  %v354_v34 = vadd.f32 %v353_v32, %v848_v50  ;;  %v467_v35 = vadd.f32 %v466_v33, %v850_v51 }
  0xfa   :  { %v357_v36 = vpop.f32.mrf.mxu0  ;;  %v470_v37 = vpop.f32.mrf.mxu1 }
  0xfb   :  { %540 = vst [vmem:[%s1111_s3 + $0xa8] sm:$0xff] %v354_v34  ;;  %542 = vst [vmem:[%s1111_s3 + $0xb8] sm:$0xff] %v467_v35  ;;  %v358_v38 = vadd.f32 %v357_v36, %v844_v48  ;;  %v471_v39 = vadd.f32 %v470_v37, %v846_v49 }
  0xfc   :  { %v359_v40 = vpop.f32.mrf.mxu0  ;;  %v472_v41 = vpop.f32.mrf.mxu1 }
  0xfd   :  { %543 = vst [vmem:[%s1111_s3 + $0xc0] sm:$0xff] %v358_v38  ;;  %545 = vst [vmem:[%s1111_s3 + $0xd0] sm:$0xff] %v471_v39  ;;  %v360_v42 = vadd.f32 %v359_v40, %v848_v50  ;;  %v473_v43 = vadd.f32 %v472_v41, %v850_v51 }
  0xfe   :  { %v361_v44 = vpop.f32.mrf.mxu0  ;;  %v474_v45 = vpop.f32.mrf.mxu1 }
  0xff   :  { %544 = vst [vmem:[%s1111_s3 + $0xc8] sm:$0xff] %v360_v42  ;;  %546 = vst [vmem:[%s1111_s3 + $0xd8] sm:$0xff] %v473_v43  ;;  %v362_v46 = vadd.f32 %v361_v44, %v844_v48  ;;  %v475_v47 = vadd.f32 %v474_v45, %v846_v49 }
 0x100   :  { %v363_v52 = vpop.f32.mrf.mxu0  ;;  %v476_v53 = vpop.f32.mrf.mxu1 }
 0x101   :  { %547 = vst [vmem:[%s1111_s3 + $0xe0] sm:$0xff] %v362_v46  ;;  %549 = vst [vmem:[%s1111_s3 + $0xf0] sm:$0xff] %v475_v47  ;;  %v364_v54 = vadd.f32 %v363_v52, %v848_v50  ;;  %v477_v55 = vadd.f32 %v476_v53, %v850_v51 }
 0x102   :  { %v367_v56 = vpop.f32.mrf.mxu0  ;;  %v480_v57 = vpop.f32.mrf.mxu1 }
 0x103   :  { %548 = vst [vmem:[%s1111_s3 + $0xe8] sm:$0xff] %v364_v54  ;;  %550 = vst [vmem:[%s1111_s3 + $0xf8] sm:$0xff] %v477_v55  ;;  %v368_v58 = vadd.f32 %v367_v56, %v844_v48  ;;  %v481_v59 = vadd.f32 %v480_v57, %v846_v49 }
 0x104   :  { %v369_v60 = vpop.f32.mrf.mxu0  ;;  %v482_v61 = vpop.f32.mrf.mxu1 }
 0x105   :  { %551 = vst [vmem:[%s1111_s3 + $0x100] sm:$0xff] %v368_v58  ;;  %553 = vst [vmem:[%s1111_s3 + $0x110] sm:$0xff] %v481_v59  ;;  %v370_v62 = vadd.f32 %v369_v60, %v848_v50  ;;  %v483_v63 = vadd.f32 %v482_v61, %v850_v51 }
 0x106   :  { %v371_v0 = vpop.f32.mrf.mxu0  ;;  %v484_v1 = vpop.f32.mrf.mxu1 }
 0x107   :  { %552 = vst [vmem:[%s1111_s3 + $0x108] sm:$0xff] %v370_v62  ;;  %554 = vst [vmem:[%s1111_s3 + $0x118] sm:$0xff] %v483_v63  ;;  %v372_v2 = vadd.f32 %v371_v0, %v844_v48  ;;  %v485_v3 = vadd.f32 %v484_v1, %v846_v49 }
 0x108   :  { %v373_v4 = vpop.f32.mrf.mxu0  ;;  %v486_v5 = vpop.f32.mrf.mxu1 }
 0x109   :  { %555 = vst [vmem:[%s1111_s3 + $0x120] sm:$0xff] %v372_v2  ;;  %557 = vst [vmem:[%s1111_s3 + $0x130] sm:$0xff] %v485_v3  ;;  %v374_v6 = vadd.f32 %v373_v4, %v848_v50  ;;  %v487_v7 = vadd.f32 %v486_v5, %v850_v51 }
 0x10a   :  { %v377_v8 = vpop.f32.mrf.mxu0  ;;  %v490_v9 = vpop.f32.mrf.mxu1 }
 0x10b   :  { %556 = vst [vmem:[%s1111_s3 + $0x128] sm:$0xff] %v374_v6  ;;  %558 = vst [vmem:[%s1111_s3 + $0x138] sm:$0xff] %v487_v7  ;;  %v378_v10 = vadd.f32 %v377_v8, %v844_v48  ;;  %v491_v11 = vadd.f32 %v490_v9, %v846_v49 }
 0x10c   :  { %v379_v12 = vpop.f32.mrf.mxu0  ;;  %v492_v13 = vpop.f32.mrf.mxu1 }
 0x10d   :  { %559 = vst [vmem:[%s1111_s3 + $0x140] sm:$0xff] %v378_v10  ;;  %561 = vst [vmem:[%s1111_s3 + $0x150] sm:$0xff] %v491_v11  ;;  %v380_v14 = vadd.f32 %v379_v12, %v848_v50  ;;  %v493_v15 = vadd.f32 %v492_v13, %v850_v51 }
 0x10e   :  { %v381_v16 = vpop.f32.mrf.mxu0  ;;  %v494_v17 = vpop.f32.mrf.mxu1 }
 0x10f   :  { %560 = vst [vmem:[%s1111_s3 + $0x148] sm:$0xff] %v380_v14  ;;  %562 = vst [vmem:[%s1111_s3 + $0x158] sm:$0xff] %v493_v15  ;;  %v382_v18 = vadd.f32 %v381_v16, %v844_v48  ;;  %v495_v19 = vadd.f32 %v494_v17, %v846_v49 }
 0x110   :  { %v383_v20 = vpop.f32.mrf.mxu0  ;;  %v496_v21 = vpop.f32.mrf.mxu1 }
 0x111   :  { %563 = vst [vmem:[%s1111_s3 + $0x160] sm:$0xff] %v382_v18  ;;  %565 = vst [vmem:[%s1111_s3 + $0x170] sm:$0xff] %v495_v19  ;;  %v384_v22 = vadd.f32 %v383_v20, %v848_v50  ;;  %v497_v23 = vadd.f32 %v496_v21, %v850_v51 }
 0x112   :  { %v387_v24 = vpop.f32.mrf.mxu0  ;;  %v500_v25 = vpop.f32.mrf.mxu1 }
 0x113   :  { %564 = vst [vmem:[%s1111_s3 + $0x168] sm:$0xff] %v384_v22  ;;  %566 = vst [vmem:[%s1111_s3 + $0x178] sm:$0xff] %v497_v23  ;;  %v388_v26 = vadd.f32 %v387_v24, %v844_v48  ;;  %v501_v27 = vadd.f32 %v500_v25, %v846_v49 }
 0x114   :  { %v389_v28 = vpop.f32.mrf.mxu0  ;;  %v502_v29 = vpop.f32.mrf.mxu1 }
 0x115   :  { %567 = vst [vmem:[%s1111_s3 + $0x180] sm:$0xff] %v388_v26  ;;  %569 = vst [vmem:[%s1111_s3 + $0x190] sm:$0xff] %v501_v27  ;;  %v390_v30 = vadd.f32 %v389_v28, %v848_v50  ;;  %v503_v31 = vadd.f32 %v502_v29, %v850_v51 }
 0x116   :  { %v391_v32 = vpop.f32.mrf.mxu0  ;;  %v504_v33 = vpop.f32.mrf.mxu1 }
 0x117   :  { %568 = vst [vmem:[%s1111_s3 + $0x188] sm:$0xff] %v390_v30  ;;  %570 = vst [vmem:[%s1111_s3 + $0x198] sm:$0xff] %v503_v31  ;;  %v392_v34 = vadd.f32 %v391_v32, %v844_v48  ;;  %v505_v35 = vadd.f32 %v504_v33, %v846_v49 }
 0x118   :  { %v393_v36 = vpop.f32.mrf.mxu0  ;;  %v506_v37 = vpop.f32.mrf.mxu1 }
 0x119   :  { %571 = vst [vmem:[%s1111_s3 + $0x1a0] sm:$0xff] %v392_v34  ;;  %573 = vst [vmem:[%s1111_s3 + $0x1b0] sm:$0xff] %v505_v35  ;;  %v394_v38 = vadd.f32 %v393_v36, %v848_v50  ;;  %v507_v39 = vadd.f32 %v506_v37, %v850_v51 }
 0x11a   :  { %v397_v40 = vpop.f32.mrf.mxu0  ;;  %v510_v41 = vpop.f32.mrf.mxu1 }
 0x11b   :  { %572 = vst [vmem:[%s1111_s3 + $0x1a8] sm:$0xff] %v394_v38  ;;  %574 = vst [vmem:[%s1111_s3 + $0x1b8] sm:$0xff] %v507_v39  ;;  %v398_v42 = vadd.f32 %v397_v40, %v844_v48  ;;  %v511_v43 = vadd.f32 %v510_v41, %v846_v49 }
 0x11c   :  { %v399_v44 = vpop.f32.mrf.mxu0  ;;  %v512_v45 = vpop.f32.mrf.mxu1 }
 0x11d   :  { %575 = vst [vmem:[%s1111_s3 + $0x1c0] sm:$0xff] %v398_v42  ;;  %577 = vst [vmem:[%s1111_s3 + $0x1d0] sm:$0xff] %v511_v43  ;;  %v400_v46 = vadd.f32 %v399_v44, %v848_v50  ;;  %v513_v47 = vadd.f32 %v512_v45, %v850_v51 }
 0x11e   :  { %v401_v52 = vpop.f32.mrf.mxu0  ;;  %v514_v53 = vpop.f32.mrf.mxu1 }
 0x11f   :  { %576 = vst [vmem:[%s1111_s3 + $0x1c8] sm:$0xff] %v400_v46  ;;  %578 = vst [vmem:[%s1111_s3 + $0x1d8] sm:$0xff] %v513_v47  ;;  %v402_v54 = vadd.f32 %v401_v52, %v844_v48  ;;  %v515_v55 = vadd.f32 %v514_v53, %v846_v49 }
 0x120   :  { %v403_v56 = vpop.f32.mrf.mxu0  ;;  %v516_v57 = vpop.f32.mrf.mxu1 }
 0x121   :  { %579 = vst [vmem:[%s1111_s3 + $0x1e0] sm:$0xff] %v402_v54  ;;  %581 = vst [vmem:[%s1111_s3 + $0x1f0] sm:$0xff] %v515_v55  ;;  %v404_v58 = vadd.f32 %v403_v56, %v848_v50  ;;  %v517_v59 = vadd.f32 %v516_v57, %v850_v51 }
 0x123   :  { %580 = vst [vmem:[%s1111_s3 + $0x1e8] sm:$0xff] %v404_v58  ;;  %582 = vst [vmem:[%s1111_s3 + $0x1f8] sm:$0xff] %v517_v59 }

</bundles_post_ra>
